<compile_context>
chip_gen: v7x
topology: tpu7x:2x2x1
jax: 0.10.0
libtpu: 0.0.40
codegen_flags: <defaults>
</compile_context>

<pallas_src>
import math

import jax
import jax.numpy as jnp
from jax.experimental import pallas as pl
from jax.experimental.pallas import tpu as pltpu


def _round_up(x: int, m: int) -> int:
    return (x + m - 1) // m * m


# ---------------------------------------------------------------------------
# Kernels
# ---------------------------------------------------------------------------
def _lastnet_kernel_fullk(h_ref, w_ref, b_ref, o_ref):
    """grid = (gn, gm); full hidden dim in one tile -> no reduction axis.

    h: (tm, Kp) bf16 activated inputs, w: (Kp, tn) bf16, b: (1, tn) f32,
    o: (tm, tn) f32.  W's index_map depends only on the outer N axis, so the
    W panel stays VMEM-resident across the inner M loop.
    """
    o_ref[...] = (
        jnp.dot(h_ref[...], w_ref[...], preferred_element_type=jnp.float32)
        + b_ref[...]
    )


def _lastnet_kernel_splitk(h_ref, w_ref, b_ref, o_ref):
    """grid = (gn, gm, gk); accumulate directly into the f32 output block."""
    k = pl.program_id(2)

    @pl.when(k == 0)
    def _init():
        # Fold the bias into the accumulator init.
        o_ref[...] = jnp.broadcast_to(b_ref[...], o_ref.shape)

    o_ref[...] += jnp.dot(
        h_ref[...], w_ref[...], preferred_element_type=jnp.float32
    )


# ---------------------------------------------------------------------------
# Wrapper
# ---------------------------------------------------------------------------
_VMEM_DATA_BUDGET = 36 * 1024 * 1024  # double-buffered operand budget


def _double_buffered_bytes(tm: int, tn: int, tk: int) -> int:
    # bf16 H + bf16 W + f32 bias + f32 out, all double buffered (worst case).
    return 2 * (tm * tk * 2 + tk * tn * 2 + tn * 4 + tm * tn * 4)


def lastnet_forward(H, W, b, *, non_linearity: str = "relu",
                    allow_fast_path: bool = True):
    """H: (B, hidden), W: (hidden, out), b: (out,) -> (B, out) f32."""
    B, hidden = H.shape
    out = W.shape[1]

    # Nonlinearity (and bf16 cast) hoisted out of the kernel: runs once per
    # element and is fused by XLA with the pad below. Dropout is identity at
    # inference time.
    # TODO(synk): training-mode dropout not implemented; it would need an
    # element-deterministic PRNG stream (pltpu.sample_block) if kernelized.
    if non_linearity == "relu":
        Hact = jnp.maximum(H.astype(jnp.float32), 0.0)
    elif non_linearity == "tanh":
        Hact = jnp.tanh(H.astype(jnp.float32))
    else:
        raise ValueError(f"unsupported non-linearity: {non_linearity}")

    # Sub-tile problems: plain XLA is strictly faster than a 1-block pallas_call.
    if allow_fast_path and (B * hidden * out) <= (1 << 16):
        return (Hact @ W.astype(jnp.float32)) + b.astype(jnp.float32)[None, :]

    # ---- tile selection -----------------------------------------------------
    n_unit = 256 if out >= 256 else 128       # full MXU width on v6e/v7x
    k_unit = 256 if hidden >= 256 else 128

    tn = min(512, _round_up(out, n_unit))
    tm = min(512, _round_up(B, 8))
    tk = _round_up(hidden, k_unit)            # prefer full-K (no reduction axis)

    # Shrink K tile first, then M tile, until double-buffered footprint fits.
    while _double_buffered_bytes(tm, tn, tk) > _VMEM_DATA_BUDGET and tk > 1024:
        tk = _round_up(tk // 2, k_unit)
    while _double_buffered_bytes(tm, tn, tk) > _VMEM_DATA_BUDGET and tm > 128:
        tm = _round_up(tm // 2, 8)

    Mp = _round_up(B, tm)
    Np = _round_up(out, tn)
    gm, gn = Mp // tm, Np // tn

    # v7x has 2 TensorCores; make sure the parallel grid has >= 2 blocks when
    # the batch is big enough to be worth sharding across cores.
    if gm * gn == 1 and B >= 64:
        tm = _round_up(-(-B // 2), 8)
        Mp = _round_up(B, tm)
        gm = Mp // tm

    Kp = _round_up(hidden, tk)
    gk = Kp // tk

    # ---- padding --------------------------------------------------------------
    # Zero K-padding is safe: the activated-H padding is zero and the padded W
    # rows are zero, so padded K contributes nothing. Padded M rows / N cols
    # are sliced off below.
    Hp = jnp.pad(Hact.astype(jnp.bfloat16), ((0, Mp - B), (0, Kp - hidden)))
    Wp = jnp.pad(W.astype(jnp.bfloat16), ((0, Kp - hidden), (0, Np - out)))
    bp = jnp.pad(b.astype(jnp.float32).reshape(1, out), ((0, 0), (0, Np - out)))

    vmem_est = _double_buffered_bytes(tm, tn, tk)
    vmem_limit = min(max(int(vmem_est * 1.5), 16 << 20), 56 << 20)

    if gk == 1:
        grid = (gn, gm)                        # N outer -> W panel VMEM-resident
        in_specs = [
            pl.BlockSpec((tm, tk), lambda j, i: (i, 0)),   # activated H (bf16)
            pl.BlockSpec((tk, tn), lambda j, i: (0, j)),   # W (bf16), per-j resident
            pl.BlockSpec((1, tn), lambda j, i: (0, j)),    # bias (f32)
        ]
        out_spec = pl.BlockSpec((tm, tn), lambda j, i: (i, j))
        semantics = ("parallel", "parallel")
        kernel = _lastnet_kernel_fullk
        w_bytes = Np * Kp * 2                  # W fetched once per N tile
    else:
        grid = (gn, gm, gk)                    # K innermost reduction
        in_specs = [
            pl.BlockSpec((tm, tk), lambda j, i, k: (i, k)),
            pl.BlockSpec((tk, tn), lambda j, i, k: (k, j)),
            pl.BlockSpec((1, tn), lambda j, i, k: (0, j)),
        ]
        out_spec = pl.BlockSpec((tm, tn), lambda j, i, k: (i, j))
        semantics = ("parallel", "parallel", "arbitrary")
        kernel = _lastnet_kernel_splitk
        w_bytes = gm * Np * Kp * 2             # W re-streamed once per M tile

    cost = pl.CostEstimate(
        flops=2 * Mp * Np * Kp,
        transcendentals=0,                     # nonlinearity hoisted to wrapper
        bytes_accessed=gn * Mp * Kp * 2 + w_bytes + Np * 4 + Mp * Np * 4,
    )

    out_padded = pl.pallas_call(
        kernel,
        out_shape=jax.ShapeDtypeStruct((Mp, Np), jnp.float32),
        grid_spec=pltpu.PrefetchScalarGridSpec(
            num_scalar_prefetch=0,
            grid=grid,
            in_specs=in_specs,
            out_specs=out_spec,
        ),
        compiler_params=pltpu.CompilerParams(
            dimension_semantics=semantics,
            vmem_limit_bytes=vmem_limit,
        ),
        cost_estimate=cost,
    )(Hp, Wp, bp)

    return out_padded[:B, :out]


# ---------------------------------------------------------------------------
# Parameter init (mirrors LastNet.init_weights) and pure-JAX reference
# ---------------------------------------------------------------------------
def init_lastnet_params(key, hidden_size: int, output_size: int):
    """xavier_uniform_(weight, gain=calculate_gain('sigmoid')=1.0), bias=0.1."""
    gain = 1.0
    limit = gain * math.sqrt(6.0 / (hidden_size + output_size))
    # torch weight is (out, in); we store its transpose (in, out) for x @ W.
    W = jax.random.uniform(
        key, (hidden_size, output_size), dtype=jnp.float32,
        minval=-limit, maxval=limit,
    )
    b = jnp.full((output_size,), 0.1, dtype=jnp.float32)
    return W, b


def lastnet_reference(H, W, b, *, non_linearity: str = "relu"):
    h = jnp.maximum(H, 0.0) if non_linearity == "relu" else jnp.tanh(H)
    return h @ W + b[None, :]


if __name__ == "__main__":
    key = jax.random.PRNGKey(0)

    # --- 1) Small shapes consistent with the module: batch=8, hidden=32, out=16.
    #        Force the Pallas path (fast path disabled) so the kernel runs.
    batch, hidden_size, output_size = 8, 32, 16
    k_h, k_w, key = jax.random.split(key, 3)
    H = jax.random.normal(k_h, (batch, hidden_size), dtype=jnp.float32)
    W, b = init_lastnet_params(k_w, hidden_size, output_size)

    out = lastnet_forward(H, W, b, non_linearity="relu", allow_fast_path=False)
    out = jax.block_until_ready(out)
    ref = lastnet_reference(H, W, b, non_linearity="relu")
    assert out.shape == (batch, output_size)
    assert jnp.allclose(out, ref, atol=2e-2, rtol=2e-2), "relu mismatch vs reference"

    # --- 2) Slightly larger tanh case exercising the tiled, multi-block
    #        parallel grid and the hoisted nonlinearity.
    batch2, hidden2, output2 = 96, 160, 192
    k_h2, k_w2, key = jax.random.split(key, 3)
    H2 = jax.random.normal(k_h2, (batch2, hidden2), dtype=jnp.float32)
    W2, b2 = init_lastnet_params(k_w2, hidden2, output2)

    out2 = lastnet_forward(H2, W2, b2, non_linearity="tanh", allow_fast_path=False)
    out2 = jax.block_until_ready(out2)
    ref2 = lastnet_reference(H2, W2, b2, non_linearity="tanh")
    assert out2.shape == (batch2, output2)
    # bf16 MXU inputs with f32 accumulation -> ~1e-2 tolerance vs f32 reference.
    assert jnp.allclose(out2, ref2, atol=2e-2, rtol=2e-2), "tanh mismatch vs reference"

    print("KERNEL_OK")
</pallas_src>

<mosaic_0001>
module attributes {stable_mosaic.version = 11 : i64} {
  func.func @_lastnet_kernel_fullk(%arg0: i32, %arg1: i32, %arg2: memref<8x128xbf16, #tpu.memory_space<vmem>>, %arg3: memref<128x128xbf16, #tpu.memory_space<vmem>>, %arg4: memref<1x128xf32, #tpu.memory_space<vmem>>, %arg5: memref<8x128xf32, #tpu.memory_space<vmem>>) attributes {dimension_semantics = [#tpu.dimension_semantics<parallel>, #tpu.dimension_semantics<parallel>], iteration_bounds = array<i64: 1, 1>, scalar_prefetch = 0 : i64, scratch_operands = 0 : i64, tpu.core_type = #tpu.core_type<tc>, window_params = [{transform_indices = @transform_0, window_bounds = array<i64: 8, 128>}, {transform_indices = @transform_1, window_bounds = array<i64: 128, 128>}, {transform_indices = @transform_2, window_bounds = array<i64: 1, 128>}, {transform_indices = @transform_3, window_bounds = array<i64: 8, 128>}]} {
    %c0 = arith.constant 0 : index
    %c0_0 = arith.constant 0 : index
    %0 = vector.load %arg2[%c0, %c0_0] : memref<8x128xbf16, #tpu.memory_space<vmem>>, vector<8x128xbf16>
    %c0_1 = arith.constant 0 : index
    %c0_2 = arith.constant 0 : index
    %1 = vector.load %arg3[%c0_1, %c0_2] : memref<128x128xbf16, #tpu.memory_space<vmem>>, vector<128x128xbf16>
    %cst = arith.constant dense<0.000000e+00> : vector<8x128xf32>
    %2 = tpu.matmul %0, %1, %cst {dimension_numbers = #tpu.dot_dimension_numbers<[1], [0], [0], [1], [0, 0, 1, 1], [], []>} : vector<8x128xbf16>, vector<128x128xbf16>, vector<8x128xf32> -> vector<8x128xf32>
    %c0_3 = arith.constant 0 : index
    %c0_4 = arith.constant 0 : index
    %3 = vector.load %arg4[%c0_3, %c0_4] : memref<1x128xf32, #tpu.memory_space<vmem>>, vector<1x128xf32>
    %4 = vector.broadcast %3 : vector<1x128xf32> to vector<8x128xf32>
    %5 = arith.addf %2, %4 : vector<8x128xf32>
    %c0_5 = arith.constant 0 : index
    %c0_6 = arith.constant 0 : index
    %6 = vector.load %arg5[%c0_5, %c0_6] : memref<8x128xf32, #tpu.memory_space<vmem>>, vector<8x128xf32>
    tpu.vector_store %arg5[%c0_5, %c0_6], %5 {strides = array<i32>} : memref<8x128xf32, #tpu.memory_space<vmem>>, vector<8x128xf32>,
    return
  }
  func.func @transform_0(%arg0: i32, %arg1: i32) -> (i32, i32) {
    %c0_i32 = arith.constant 0 : i32
    %c0_i32_0 = arith.constant 0 : i32
    return %arg1, %c0_i32 : i32, i32
  }
  func.func @transform_1(%arg0: i32, %arg1: i32) -> (i32, i32) {
    %c0_i32 = arith.constant 0 : i32
    %c0_i32_0 = arith.constant 0 : i32
    return %c0_i32, %arg0 : i32, i32
  }
  func.func @transform_2(%arg0: i32, %arg1: i32) -> (i32, i32) {
    %c0_i32 = arith.constant 0 : i32
    %c0_i32_0 = arith.constant 0 : i32
    return %c0_i32, %arg0 : i32, i32
  }
  func.func @transform_3(%arg0: i32, %arg1: i32) -> (i32, i32) {
    %c0_i32 = arith.constant 0 : i32
    return %arg1, %arg0 : i32, i32
  }
}

</mosaic_0001>

<bundles_post_ra>
// kernel: tpu_custom_call.1
= control target key start
LH: loop header
LB: loop body
LE: loop exit
PB: predicated region body
PF: predicated region fallthrough
CT: control target
= control target key end

     0   :  { %8 = vsyncpa [#allocation3], 0  ;;  %s369_s0 = inlined_call_operand.hbm [shape: bf16[8,128], index: 0, kind: input, shape index: {}]   ;;  %s370_s1 = inlined_call_operand.hbm [shape: bf16[128,128], index: 1, kind: input, shape index: {}]   ;;  %s371_s2 = inlined_call_operand.vmem [shape: f32[1,128], index: 2, kind: input, shape index: {}]   ;;  %s372_s3 = inlined_call_operand.hbm [shape: f32[8,128], index: 3, kind: output, shape index: {}]  }
   0x1   :  { %9 = vsyncpa [#allocation6], 0 }
   0x2   :  { %10 = vsyncpa [#allocation4], 0  ;;  %s296_s12 = smov [#allocation2]   ;;  %s297_s14 = smov [#allocation5]  }
   0x3   :  { %s17_s13 = sshll.u32 %s296_s12, 4  ;;  %s26_s15 = sshll.u32 %s297_s14, 4  ;;  %s18_s13 = int_to_ptr.vmem [resolvable:$true] %s17_s13  ;;  %s323_s15 = int_to_ptr.vmem [resolvable:$true] %s26_s15 }
   0x4   :  { %s224_s18 = scalar_lea.hbm %s369_s0, 64 }
   0x5   :  { %p225_p0 = scmp.ne.s32.totalorder %s369_s0, %s224_s18  ;;  %p228_p1 = scmp.lt.u32.totalorder %s224_s18, %s369_s0 }
   0x7   :  { %p230_p2 = pnand %p228_p1, %p225_p0 }
   0x9   :  { %233 = shalt.err (!%p230_p2)
}
   0xa   :  { %s234_s23 = scalar_lea.vmem %s18_s13, 64  ;;  %p239_p4 = scmp.lt.s32.totalorder %s18_s13, %s18_s13 }
   0xb   :  { %p235_p3 = scmp.ne.s32.totalorder %s18_s13, %s234_s23  ;;  %p240_p5 = scmp.lt.s32.totalorder %s234_s23, %s234_s23 }
   0xd   :  { %p241_p6 = por %p240_p5, %p239_p4 }
   0xf   :  { %p242_p7 = pnand %p241_p6, %p235_p3 }
  0x11   :  { %245 = shalt.err (!%p242_p7)
}
  0x12   :  { %20 = dma.hbm_to_vmem [thread:$0]  %s369_s0, 64, %s18_s13, [#allocation3]  }
  0x13   :  { %s246_s28 = scalar_lea.hbm %s370_s1, 1024 }
  0x14   :  { %p247_p8 = scmp.ne.s32.totalorder %s370_s1, %s246_s28  ;;  %p250_p9 = scmp.lt.u32.totalorder %s246_s28, %s370_s1 }
  0x16   :  { %p252_p10 = pnand %p250_p9, %p247_p8 }
  0x18   :  { %255 = shalt.err (!%p252_p10)
}
  0x19   :  { %s256_s6 = scalar_lea.vmem %s323_s15, 1024  ;;  %p261_p12 = scmp.lt.s32.totalorder %s323_s15, %s323_s15 }
  0x1a   :  { %p257_p11 = scmp.ne.s32.totalorder %s323_s15, %s256_s6  ;;  %p262_p13 = scmp.lt.s32.totalorder %s256_s6, %s256_s6 }
  0x1c   :  { %p263_p0 = por %p262_p13, %p261_p12 }
  0x1e   :  { %p264_p1 = pnand %p263_p0, %p257_p11 }
  0x20   :  { %267 = shalt.err (!%p264_p1)
}
  0x21   :  { %s298_s0 = smov 64   ;;  %s299_s7 = smov 4  }
  0x22   :  { %32 = dma.hbm_to_vmem [thread:$0]  %s370_s1, 1024, %s323_s15, [#allocation6], %s298_s0, %s298_s0, %s299_s7  }
  0x23   :  { %290 = dma.done.wait [#allocation3], 64  }
  0x24   :  { %291 = vsyncadd [#allocation3], 4294967232 }
  0x25   :  { %292 = dma.done.wait [#allocation6], 1024  }
  0x26   :  { %293 = vsyncadd [#allocation6], 4294966272  ;;  %v300_v0 = vmov 0.0   ;;  %vm301_vm0 = vmmov 0   ;;  %v216_v1 = vld [vmem:[#allocation5] sm:$0xff]   ;;  %v217_v2 = vld [vmem:[#allocation5 + $0x8] sm:$0xff]  }
  0x27   :  { %189 = vmatprep.subr.bf16.mxu0 %v300_v0  ;;  %205 = vmatprep.mubr.msk.bf16.mxu0 %vm301_vm0, %v300_v0  ;;  %v218_v3 = vld [vmem:[#allocation5 + $0x10] sm:$0xff]   ;;  %v219_v4 = vld [vmem:[#allocation5 + $0x18] sm:$0xff]   ;;  %v220_v5 = vld [vmem:[#allocation5 + $0x20] sm:$0xff]   ;;  %s302_s11 = smov [#allocation7]  }
  0x28   :  { %190 = vmatpush3.bf16.msra.mxu0 %v216_v1  ;;  %v221_v6 = vld [vmem:[#allocation5 + $0x28] sm:$0xff]   ;;  %v222_v7 = vld [vmem:[#allocation5 + $0x30] sm:$0xff]   ;;  %v223_v8 = vld [vmem:[#allocation5 + $0x38] sm:$0xff]   ;;  %s161_s12 = sshll.u32 %s302_s11, 4  ;;  %s162_s12 = int_to_ptr.vmem [resolvable:$true] %s161_s12 }
  0x29   :  { %191 = vmatprep.subr.bf16.mxu0 %v300_v0  ;;  %v42_v9 = vld [vmem:[#allocation2] sm:$0xf]  ;;  %s268_s13 = scalar_lea.vmem %s162_s12, 128  ;;  %p273_p3 = scmp.lt.s32.totalorder %s162_s12, %s162_s12 }
  0x2a   :  { %v171_v10 = vld [vmem:[%s371_s2] ss:$0 sm:$0xff]  ;;  %p269_p2 = scmp.ne.s32.totalorder %s162_s12, %s268_s13  ;;  %p274_p4 = scmp.lt.s32.totalorder %s268_s13, %s268_s13 }
  0x2c   :  { %192 = vmatpush3.bf16.msra.mxu0 %v217_v2  ;;  %p275_p5 = por %p274_p4, %p273_p3 }
  0x2d   :  { %193 = vmatprep.subr.bf16.mxu0 %v300_v0 }
  0x2e   :  { %p276_p6 = pnand %p275_p5, %p269_p2 }
  0x30   :  { %194 = vmatpush3.bf16.msra.mxu0 %v218_v3 }
  0x31   :  { %195 = vmatprep.subr.bf16.mxu0 %v300_v0 }
  0x34   :  { %196 = vmatpush3.bf16.msra.mxu0 %v219_v4 }
  0x35   :  { %197 = vmatprep.subr.bf16.mxu0 %v300_v0 }
  0x38   :  { %198 = vmatpush3.bf16.msra.mxu0 %v220_v5 }
  0x39   :  { %199 = vmatprep.subr.bf16.mxu0 %v300_v0 }
  0x3c   :  { %200 = vmatpush3.bf16.msra.mxu0 %v221_v6 }
  0x3d   :  { %201 = vmatprep.subr.bf16.mxu0 %v300_v0 }
  0x40   :  { %202 = vmatpush3.bf16.msra.mxu0 %v222_v7 }
  0x41   :  { %203 = vmatprep.subr.bf16.mxu0 %v300_v0 }
  0x44   :  { %204 = vmatpush3.bf16.msra.mxu0 %v223_v8 }
  0x47   :  { %206 = vmatmul.mubr.bf16.vlgmr.msra.gmra.mrb[0].mxu0 %v42_v9 }
 0x11a   :  { %v148_v11 = vpop.f32.mrb[0].mxu0 }
 0x11b   :  { %v149_v12 = vadd.f32 %v171_v10, %v148_v11  ;;  %v207_v13 = vpop.f32.mrb[1].mxu0 }
 0x11c   :  { %v151_v14 = vpop.f32.mrb[2].mxu0 }
 0x11d   :  { %154 = vst [vmem:[#allocation7] sm:$0xff] %v149_v12  ;;  %v208_v15 = vpop.f32.mrb[3].mxu0 }
 0x11e   :  { %279 = shalt.err (!%p276_p6)
}
 0x11f   :  { %s280_s2 = scalar_lea.hbm %s372_s3, 128 }
 0x120   :  { %p281_p7 = scmp.ne.s32.totalorder %s372_s3, %s280_s2  ;;  %p284_p8 = scmp.lt.u32.totalorder %s280_s2, %s372_s3 }
 0x122   :  { %p286_p9 = pnand %p284_p8, %p281_p7 }
 0x124   :  { %289 = shalt.err (!%p286_p9)
}
 0x125   :  { %164 = dma.vmem_to_hbm [thread:$0]  %s162_s12, 128, %s372_s3, [#allocation4]  }
 0x126   :  { %294 = dma.done.wait [#allocation4], 128  }
 0x127   :  { %295 = vsyncadd [#allocation4], 4294967168 }
 0x128   :  { %168 = vsyncpa [#allocation3], 1 }
 0x129   :  { %169 = vsyncpa [#allocation6], 1 }
 0x12a   :  { %170 = vsyncpa [#allocation4], 1 }

</bundles_post_ra>
